<compile_context>
chip_gen: v7x
topology: tpu7x:2x2x1
jax: 0.10.0
libtpu: 0.0.40
codegen_flags: <defaults>
</compile_context>

<pallas_src>
import jax
import jax.numpy as jnp
from jax.experimental import pallas as pl
from jax.experimental.pallas import tpu as pltpu


def layerscale_kernel(x_ref, w_ref, b_ref, scale_ref, o_ref):
    # fn(x) = x @ W + b  (Linear), then broadcast multiply by the layer scale.
    y = jnp.dot(x_ref[...], w_ref[...], preferred_element_type=jnp.float32)
    y = (y + b_ref[...].astype(jnp.float32)) * scale_ref[...].astype(jnp.float32)
    o_ref[...] = y.astype(o_ref.dtype)


def _round_up(x, m):
    return ((x + m - 1) // m) * m


def _sublane_multiple(dtype):
    # 8 rows for 4-byte dtypes, 16 for bf16, 32 for int8/fp8 (packed sublanes).
    return max(8, 32 // jnp.dtype(dtype).itemsize)


def _vmem_budget_bytes():
    """Per-generation usable VMEM: ~3/4 of physical, capped at 100 MiB.
    -> ~96 MiB on v5e/v6e (128 MiB), ~48 MiB on v7x (64 MiB per TC)."""
    try:
        cap = pltpu.get_tpu_info().vmem_capacity_bytes
    except Exception:  # no TPU info available: be conservative (v7x-sized)
        cap = 64 * 1024 * 1024
    return int(min((cap * 3) // 4, 100 * 1024 * 1024))


def _pick_tile_m(m, d_pad, x_dtype, w_dtype, out_dtype, budget_bytes):
    """Largest row tile (multiple of the dtype sublane packing, <= 1024) whose
    working set fits the per-generation VMEM budget, while keeping >= 4 grid
    steps when M allows it (so v7x megacore gets both TensorCores busy)."""
    sub = _sublane_multiple(x_dtype)
    x_sz = jnp.dtype(x_dtype).itemsize
    w_sz = jnp.dtype(w_dtype).itemsize
    o_sz = jnp.dtype(out_dtype).itemsize

    def working(tm):
        return (2 * tm * d_pad * x_sz        # x tile, double-buffered
                + 2 * tm * d_pad * o_sz      # out tile, double-buffered
                + tm * d_pad * 4             # f32 matmul / elementwise intermediate
                + d_pad * d_pad * w_sz       # W, single buffer (Buffered(1))
                + 2 * d_pad * 4)             # bias + scale, single buffer

    # Megacore cap: target >= 4 grid steps when M is large enough.
    megacore_cap = max(sub, _round_up(pl.cdiv(m, 4), sub))
    tm = min(1024, _round_up(m, sub), megacore_cap)
    tm = max(sub, (tm // sub) * sub)
    while tm > sub and working(tm) > budget_bytes:
        tm = max(sub, ((tm // 2) // sub) * sub)
    return tm


def layer_scale_forward(x, w, b, scale):
    """x: (B, N, D); w: (D, D); b: (D,); scale: (1, 1, D)."""
    B, N, D = x.shape
    M = B * N
    out_dtype = x.dtype

    # Lane-dense feature axis: pad D only when it is not already 128-aligned.
    Dp = D if D % 128 == 0 else _round_up(D, 128)
    budget = _vmem_budget_bytes()
    TM = _pick_tile_m(M, Dp, x.dtype, w.dtype, out_dtype, budget)

    x2 = x.reshape(M, D)
    wp = w
    bp = b.reshape(1, D)
    sp = scale.reshape(1, D)
    if Dp != D:
        # Uncommon case: one-time pad of the feature axis (zero columns are
        # multiplied by zero scale and sliced off below).
        x2 = jnp.pad(x2, ((0, 0), (0, Dp - D)))
        wp = jnp.pad(w, ((0, Dp - D), (0, Dp - D)))
        bp = jnp.pad(bp, ((0, 0), (0, Dp - D)))
        sp = jnp.pad(sp, ((0, 0), (0, Dp - D)))

    out = pl.pallas_call(
        layerscale_kernel,
        out_shape=jax.ShapeDtypeStruct((M, Dp), out_dtype),
        grid=(pl.cdiv(M, TM),),   # partial last block masked by Pallas; no M pad
        in_specs=[
            # x: streamed row tiles (double-buffered by the pipeline).
            pl.BlockSpec((TM, Dp), lambda i: (i, 0)),
            # W / bias / scale: constant index_map -> resident, single buffer.
            pl.BlockSpec((Dp, Dp), lambda i: (0, 0), pipeline_mode=pl.Buffered(1)),
            pl.BlockSpec((1, Dp), lambda i: (0, 0), pipeline_mode=pl.Buffered(1)),
            pl.BlockSpec((1, Dp), lambda i: (0, 0), pipeline_mode=pl.Buffered(1)),
        ],
        out_specs=pl.BlockSpec((TM, Dp), lambda i: (i, 0)),
        compiler_params=pltpu.CompilerParams(
            dimension_semantics=("parallel",),
            vmem_limit_bytes=budget),
    )(x2, wp, bp, sp)

    if Dp != D:
        out = out[:, :D]
    return out.reshape(B, N, D)


if __name__ == "__main__":
    # Small shapes consistent with a transformer-block LayerScale wrapper.
    # D = 128 keeps the feature (lane) axis dense; depth = 12 -> init_eps = 0.1.
    B, N, D = 2, 8, 128
    depth = 12
    init_eps = 0.1 if depth <= 18 else (1e-5 if depth <= 24 else 1e-6)

    key = jax.random.PRNGKey(0)
    kx, kw, kb = jax.random.split(key, 3)
    x = jax.random.normal(kx, (B, N, D), dtype=jnp.float32)

    # Deterministic synthetic Linear(dim, dim) parameters for the wrapped fn.
    w = jax.random.normal(kw, (D, D), dtype=jnp.float32) * (1.0 / jnp.sqrt(D))
    b = jax.random.normal(kb, (D,), dtype=jnp.float32) * 0.01
    scale = jnp.full((1, 1, D), init_eps, dtype=jnp.float32)  # zeros_().fill_(init_eps)

    out = jax.block_until_ready(layer_scale_forward(x, w, b, scale))

    # Pure-JAX reference for the same fn(x) * scale semantics.
    ref = (x @ w + b) * scale
    assert out.shape == (B, N, D)
    assert jnp.allclose(out, ref, atol=1e-5, rtol=1e-5)

    print("KERNEL_OK")
</pallas_src>

<mosaic_0001>
module attributes {stable_mosaic.version = 11 : i64} {
  func.func @layerscale_kernel(%arg0: i32, %arg1: memref<8x128xf32, #tpu.memory_space<vmem>>, %arg2: memref<128x128xf32, #tpu.memory_space<vmem>>, %arg3: memref<1x128xf32, #tpu.memory_space<vmem>>, %arg4: memref<1x128xf32, #tpu.memory_space<vmem>>, %arg5: memref<8x128xf32, #tpu.memory_space<vmem>>) attributes {dimension_semantics = [#tpu.dimension_semantics<parallel>], iteration_bounds = array<i64: 2>, scalar_prefetch = 0 : i64, scratch_operands = 0 : i64, tpu.core_type = #tpu.core_type<tc>, window_params = [{transform_indices = @transform_0, window_bounds = array<i64: 8, 128>}, {pipeline_mode = #tpu.pipeline_mode<synchronous>, transform_indices = @transform_1, window_bounds = array<i64: 128, 128>}, {pipeline_mode = #tpu.pipeline_mode<synchronous>, transform_indices = @transform_2, window_bounds = array<i64: 1, 128>}, {pipeline_mode = #tpu.pipeline_mode<synchronous>, transform_indices = @transform_3, window_bounds = array<i64: 1, 128>}, {transform_indices = @transform_4, window_bounds = array<i64: 8, 128>}]} {
    %c0 = arith.constant 0 : index
    %c0_0 = arith.constant 0 : index
    %0 = vector.load %arg1[%c0, %c0_0] : memref<8x128xf32, #tpu.memory_space<vmem>>, vector<8x128xf32>
    %c0_1 = arith.constant 0 : index
    %c0_2 = arith.constant 0 : index
    %1 = vector.load %arg2[%c0_1, %c0_2] : memref<128x128xf32, #tpu.memory_space<vmem>>, vector<128x128xf32>
    %cst = arith.constant dense<0.000000e+00> : vector<8x128xf32>
    %2 = tpu.matmul %0, %1, %cst {dimension_numbers = #tpu.dot_dimension_numbers<[1], [0], [0], [1], [0, 0, 1, 1], [], []>} : vector<8x128xf32>, vector<128x128xf32>, vector<8x128xf32> -> vector<8x128xf32>
    %c0_3 = arith.constant 0 : index
    %c0_4 = arith.constant 0 : index
    %3 = vector.load %arg3[%c0_3, %c0_4] : memref<1x128xf32, #tpu.memory_space<vmem>>, vector<1x128xf32>
    %4 = vector.broadcast %3 : vector<1x128xf32> to vector<8x128xf32>
    %5 = arith.addf %2, %4 : vector<8x128xf32>
    %c0_5 = arith.constant 0 : index
    %c0_6 = arith.constant 0 : index
    %6 = vector.load %arg4[%c0_5, %c0_6] : memref<1x128xf32, #tpu.memory_space<vmem>>, vector<1x128xf32>
    %7 = vector.broadcast %6 : vector<1x128xf32> to vector<8x128xf32>
    %8 = arith.mulf %5, %7 : vector<8x128xf32>
    %c0_7 = arith.constant 0 : index
    %c0_8 = arith.constant 0 : index
    %9 = vector.load %arg5[%c0_7, %c0_8] : memref<8x128xf32, #tpu.memory_space<vmem>>, vector<8x128xf32>
    tpu.vector_store %arg5[%c0_7, %c0_8], %8 {strides = array<i32>} : memref<8x128xf32, #tpu.memory_space<vmem>>, vector<8x128xf32>,
    return
  }
  func.func @transform_0(%arg0: i32) -> (i32, i32) {
    %c0_i32 = arith.constant 0 : i32
    %c0_i32_0 = arith.constant 0 : i32
    return %arg0, %c0_i32 : i32, i32
  }
  func.func @transform_1(%arg0: i32) -> (i32, i32) {
    %c0_i32 = arith.constant 0 : i32
    %c0_i32_0 = arith.constant 0 : i32
    %c0_i32_1 = arith.constant 0 : i32
    return %c0_i32, %c0_i32_0 : i32, i32
  }
  func.func @transform_2(%arg0: i32) -> (i32, i32) {
    %c0_i32 = arith.constant 0 : i32
    %c0_i32_0 = arith.constant 0 : i32
    %c0_i32_1 = arith.constant 0 : i32
    return %c0_i32, %c0_i32_0 : i32, i32
  }
  func.func @transform_3(%arg0: i32) -> (i32, i32) {
    %c0_i32 = arith.constant 0 : i32
    %c0_i32_0 = arith.constant 0 : i32
    %c0_i32_1 = arith.constant 0 : i32
    return %c0_i32, %c0_i32_0 : i32, i32
  }
  func.func @transform_4(%arg0: i32) -> (i32, i32) {
    %c0_i32 = arith.constant 0 : i32
    %c0_i32_0 = arith.constant 0 : i32
    return %arg0, %c0_i32 : i32, i32
  }
}

</mosaic_0001>

<bundles_post_ra>
// kernel: tpu_custom_call.1
= control target key start
LH: loop header
LB: loop body
LE: loop exit
PB: predicated region body
PF: predicated region fallthrough
CT: control target
= control target key end

     0   :  { %9 = vsyncpa [#allocation3], 0  ;;  %s951_s0 = inlined_call_operand.hbm [shape: f32[16,128], index: 0, kind: input, shape index: {}]   ;;  %s952_s1 = inlined_call_operand.hbm [shape: f32[128,128], index: 1, kind: input, shape index: {}]   ;;  %s953_s2 = inlined_call_operand.vmem [shape: f32[1,128], index: 2, kind: input, shape index: {}]   ;;  %s954_s3 = inlined_call_operand.vmem [shape: f32[1,128], index: 3, kind: input, shape index: {}]   ;;  %s955_s4 = inlined_call_operand.hbm [shape: f32[16,128], index: 4, kind: output, shape index: {}]  }
   0x1   :  { %11 = vsyncpa [#allocation3 + $0x1], 0 }
   0x2   :  { %12 = vsyncpa [#allocation6], 0 }
   0x3   :  { %13 = vsyncpa [#allocation4], 0 }
   0x4   :  { %15 = vsyncpa [#allocation4 + $0x1], 0  ;;  %s742_s15 = smov 0   ;;  %s744_s16 = smov 0  }
   0x5   :  { %s746_s17 = smov 0   ;;  %s748_s18 = smov 0  }
   0x6 LB: > { %s763_s19 = sadd.s32 4294967295, %s707_s18   ;;  %s425_s20 = sadd.s32 4294967294, %s707_s18   ;;  %s707_s18 = sphi %s748_s18, %s975_s18   ;;  %s703_s17 = sphi %s746_s17, %s974_s17   ;;  %s699_s16 = sphi %s744_s16, %s973_s16   ;;  %s695_s15 = sphi %s742_s15, %s972_s15  }
   0x7   : > { %p41_p0 = scmp.ne.s32.totalorder %s699_s16, %s695_s15  ;;  %p956_p1 = scmp.eq.s32.totalorder %s763_s19, 0 }
   0x8   : > { %p134_p3 = scmp.eq.s32.totalorder %s425_s20, 1  ;;  %p426_p5 = scmp.ge.s32.totalorder %s707_s18, 1 }
   0x9   : > { %p772_p4 = por %p956_p1, %p41_p0  ;;  %p141_p7 = scmp.lt.s32.totalorder %s707_s18, 3 }
   0xa   : > { %p777_p6 = por %p134_p3, %p41_p0  ;;  %s709_s24 = smov [#allocation5]  }
   0xb   : > { %s959_s21 = scalar_select %p772_p4, 1, 0 }
   0xc   : > { %s960_s22 = scalar_select %p777_p6, 1, 0 }
   0xd   : > { %p782_p8 = pnand %p426_p5, %p141_p7  ;;  %s153_s25 = sshll.u32 %s709_s24, 4  ;;  %s786_s25 = int_to_ptr.vmem [resolvable:$true] %s153_s25 }
   0xe   : > { %s798_s27 = sadd.s32 1, %s707_s18   ;;  %s28_s28 = sadd.s32 1, %s703_s17 }
   0xf   : > { %s961_s23 = scalar_select %p782_p8, 1, 0 }
  0x10   : > { %p525_p9 = pneg %p782_p8  ;;  %s25_s29 = ssub.s32 %s707_s18, %s798_s27 }
  0x11   : > { %s579_s6 = scalar_lea.hbm %s952_s1, 2048 }
  0x12   : > { %p793_p11 = pnand %p525_p9, %p956_p1  ;;  %p580_p12 = scmp.ne.s32.totalorder %s952_s1, %s579_s6 }
  0x13   : > { %p586_p5 = scmp.lt.u32.totalorder %s579_s6, %s952_s1 }
  0x14   : > { %p581_p13 = pneg %p793_p11 }
  0x16   : > { %p582_p0 = pnand %p581_p13, %p580_p12 }
  0x18   : > { %p583_p3 = pneg %p582_p0 }
  0x1a   : > { %p588_p7 = pnand %p586_p5, %p583_p3 }
  0x1c   : > { %591 = shalt.err (!%p588_p7)
}
  0x1d   : > { %s592_s11 = scalar_lea.vmem %s786_s25, 2048  ;;  %p600_p2 = scmp.lt.s32.totalorder %s786_s25, %s786_s25 }
  0x1e   : > { %p593_p9 = scmp.ne.s32.totalorder %s786_s25, %s592_s11  ;;  %p601_p6 = scmp.lt.s32.totalorder %s592_s11, %s592_s11 }
  0x20   : > { %p595_p10 = pnand %p593_p9, %p581_p13  ;;  %p602_p4 = por %p601_p6, %p600_p2 }
  0x22   : > { %p596_p1 = pneg %p595_p10 }
  0x24   : > { %p603_p8 = pnand %p602_p4, %p596_p1 }
  0x26   : > { %606 = shalt.err (!%p603_p8)
}
  0x27   : > { %s710_s12 = smov 128   ;;  %s711_s13 = smov 8  }
  0x28   : > { %528 = dma.hbm_to_vmem [thread:$0]  (!%p793_p11), %s952_s1, 2048, %s786_s25, [#allocation6], %s710_s12, %s710_s12, %s711_s13  }
  0x29   : > { %p26_p2 = scmp.eq.s32.totalorder %s25_s29, 0  ;;  %p35_p1 = scmp.ne.s32.totalorder %s703_s17, %s699_s16 }
  0x2a   : > { %p36_p4 = scmp.eq.s32.totalorder %s707_s18, 0  ;;  %p538_p6 = scmp.lt.s32.totalorder %s707_s18, 2 }
  0x2b   : > { %s829_s24 = scalar_select %p26_p2, %s703_s17, %s28_s28  }
  0x2c   : > { %p37_p8 = por %p36_p4, %p35_p1  ;;  %p963_p10 = scmp.eq.s32.totalorder %s763_s19, 1 }
  0x2d   : > { %s173_s5 = sand.u32 1, %s703_s17   ;;  %s430_s6 = sshll.u32 %s707_s18, 7 }
  0x2e   : > { %p833_p12 = por %p963_p10, %p35_p1  ;;  %s429_s7 = sshll.u32 %s173_s5, 3 }
  0x2f   : > { %s842_s9 = scalar_lea.hbm %s951_s0, %s430_s6  ;;  %s177_s25 = scalar_lea.vmem [#allocation2], %s429_s7 }
  0x30   : > { %s184_s28 = sshll.u32 %s177_s25, 4  ;;  %p844_p11 = pnand %p538_p6, %p37_p8  ;;  %s848_s28 = int_to_ptr.vmem [resolvable:$true] %s184_s28 }
  0x31   : > { %s174_s10 = scalar_lea.sflag [#allocation3], %s173_s5  ;;  %s607_s11 = scalar_lea.hbm %s842_s9, 128 }
  0x32   : > { %p608_p13 = scmp.ne.s32.totalorder %s842_s9, %s607_s11  ;;  %p609_p0 = pneg %p844_p11 }
  0x33   : > { %s612_s14 = scalar_lea.hbm %s951_s0, 256  ;;  %p613_p7 = scmp.lt.u32.totalorder %s842_s9, %s951_s0 }
  0x34   : > { %p610_p3 = pnand %p609_p0, %p608_p13  ;;  %p614_p9 = scmp.lt.u32.totalorder %s612_s14, %s607_s11 }
  0x35   : > { %p616_p1 = scmp.lt.u32.totalorder %s607_s11, %s842_s9 }
  0x36   : > { %p611_p5 = pneg %p610_p3  ;;  %p615_p2 = por %p614_p9, %p613_p7 }
  0x38   : > { %p617_p4 = por %p616_p1, %p615_p2 }
  0x3a   : > { %p618_p6 = pnand %p617_p4, %p611_p5 }
  0x3c   : > { %621 = shalt.err (!%p618_p6)
}
  0x3d   : > { %s622_s5 = scalar_lea.vmem %s848_s28, 128  ;;  %s712_s7 = smov [#allocation2]  }
  0x3e   : > { %p623_p8 = scmp.ne.s32.totalorder %s848_s28, %s622_s5  ;;  %s627_s26 = sshll.u32 %s712_s7, 4  ;;  %s628_s26 = int_to_ptr.vmem [resolvable:$false] %s627_s26 }
  0x3f   : > { %s629_s8 = scalar_lea.vmem %s628_s26, 256  ;;  %p630_p3 = scmp.lt.s32.totalorder %s848_s28, %s628_s26 }
  0x40   : > { %p625_p10 = pnand %p623_p8, %p609_p0  ;;  %p631_p7 = scmp.lt.s32.totalorder %s629_s8, %s622_s5 }
  0x42   : > { %p626_p13 = pneg %p625_p10  ;;  %p632_p9 = por %p631_p7, %p630_p3 }
  0x44   : > { %p633_p2 = pnand %p632_p9, %p626_p13 }
  0x46   : > { %636 = shalt.err (!%p633_p2)
}
  0x47   : > { %532 = dma.hbm_to_vmem [thread:$0]  (!%p844_p11), %s842_s9, 128, %s848_s28, %s174_s10  }
  0x48   : > { %p966_p5 = scmp.ne.s32.totalorder %s961_s23, 0 }
  0x49   : > { %s878_s25 = sand.u32 (!%p966_p5), 1, %s699_s16   ;;  %p967_p0 = scmp.ne.s32.totalorder (!%p966_p5), %s959_s21, 0 }
  0x4a   : > { %193 = sbr.rel (%p966_p5) target bundleno = 349 (0x15d), region = 36  ;;  %s432_s11 = sshll.u32 (!%p966_p5), %s878_s25, 3 }
  0x4b   : > { %s196_s12 = scalar_lea.sflag (!%p966_p5), [#allocation3], %s878_s25  ;;  %s884_s13 = scalar_lea.vmem (!%p966_p5), [#allocation2], %s432_s11 }
  0x51   : > { %682 = dma.done.wait (%p967_p0), %s196_s12, 128  }
  0x52   : > { %684 = vsyncadd (%p967_p0), %s196_s12, 4294967168  ;;  %p968_p11 = scmp.eq.s32.totalorder %s763_s19, 0 }
  0x54   : > { %686 = dma.done.wait (%p968_p11), [#allocation6], 2048   ;;  %p969_p1 = pmov %p968_p11 }
  0x55   : > { %v713_v0 = vmov 0.0|0.0   ;;  %vm714_vm0 = vmmov 0   ;;  %v715_v1 = vmov 0.0   ;;  %v229_v2 = vld [vmem:[#allocation5] sm:$0xff]  ;;  %v230_v3 = vld [vmem:[#allocation5 + $0x8] sm:$0xff]  ;;  %v231_v4 = vld [vmem:[#allocation5 + $0x10] sm:$0xff] }
  0x56   : > { %688 = vsyncadd (%p969_p1), [#allocation6], 4294965248  ;;  %493 = vmatprep.subr.bf16.mxu0 %v713_v0  ;;  %490 = vmatprep.mubr.msk.f32.mxu0 %vm714_vm0, %v715_v1  ;;  %v494_v5 = vpack.c.bf16 %v230_v3, %v229_v2  ;;  %v232_v6 = vld [vmem:[#allocation5 + $0x18] sm:$0xff]  ;;  %v233_v8 = vld [vmem:[#allocation5 + $0x20] sm:$0xff]  ;;  %s438_s29 = sshll.u32 %s763_s19, 7  ;;  %s227_s10 = scalar_lea.vmem [#allocation7], %s432_s11 }
  0x57   : > { %v497_v7 = vpack.c.bf16 %v232_v6, %v231_v4  ;;  %v234_v9 = vld [vmem:[#allocation5 + $0x28] sm:$0xff]  ;;  %v235_v11 = vld [vmem:[#allocation5 + $0x30] sm:$0xff]  ;;  %v236_v12 = vld [vmem:[#allocation5 + $0x38] sm:$0xff]  ;;  %s345_s14 = sshll.u32 %s227_s10, 4  ;;  %s907_s5 = scalar_lea.hbm %s955_s4, %s438_s29  ;;  %s909_s14 = int_to_ptr.vmem [resolvable:$true] %s345_s14 }
  0x58   : > { %495 = vmatpush3.bf16.msra.mxu0 %v494_v5  ;;  %v500_v10 = vpack.c.bf16 %v234_v9, %v233_v8  ;;  %v503_v13 = vpack.c.bf16 %v236_v12, %v235_v11  ;;  %v237_v14 = vld [vmem:[#allocation5 + $0x40] sm:$0xff]  ;;  %v238_v15 = vld [vmem:[#allocation5 + $0x48] sm:$0xff]  ;;  %v239_v17 = vld [vmem:[#allocation5 + $0x50] sm:$0xff]  ;;  %s332_s7 = scalar_lea.sflag [#allocation4], %s878_s25  ;;  %s637_s26 = scalar_lea.vmem %s909_s14, 128 }
  0x59   : > { %496 = vmatprep.subr.bf16.mxu0 %v713_v0  ;;  %v506_v16 = vpack.c.bf16 %v238_v15, %v237_v14  ;;  %v240_v18 = vld [vmem:[#allocation5 + $0x58] sm:$0xff]  ;;  %v241_v20 = vld [vmem:[#allocation5 + $0x60] sm:$0xff]  ;;  %v242_v21 = vld [vmem:[#allocation5 + $0x68] sm:$0xff]  ;;  %p638_p4 = scmp.ne.s32.totalorder %s909_s14, %s637_s26  ;;  %s716_s19 = smov [#allocation7]  }
  0x5a   : > { %v509_v19 = vpack.c.bf16 %v240_v18, %v239_v17  ;;  %v512_v22 = vpack.c.bf16 %v242_v21, %v241_v20  ;;  %v243_v23 = vld [vmem:[#allocation5 + $0x70] sm:$0xff]  ;;  %v244_v24 = vld [vmem:[#allocation5 + $0x78] sm:$0xff]  ;;  %s641_s8 = sshll.u32 %s716_s19, 4  ;;  %s642_s8 = int_to_ptr.vmem [resolvable:$false] %s641_s8 }
  0x5b   : > { %v515_v25 = vpack.c.bf16 %v244_v24, %v243_v23  ;;  %v228_v26 = vld [vmem:[%s884_s13] sm:$0xff]  ;;  %p639_p6 = pnand %p638_p4, %p833_p12  ;;  %s643_s11 = scalar_lea.vmem %s642_s8, 256 }
  0x5c   : > { %498 = vmatpush3.bf16.msra.mxu0 %v497_v7  ;;  %v435_v27 = vld [vmem:[%s953_s2] ss:$0 sm:$0xff]  ;;  %p644_p10 = scmp.lt.s32.totalorder %s909_s14, %s642_s8  ;;  %p645_p13 = scmp.lt.s32.totalorder %s643_s11, %s637_s26 }
  0x5d   : > { %499 = vmatprep.subr.bf16.mxu0 %v713_v0  ;;  %v436_v29 = vld [vmem:[%s954_s3] ss:$0 sm:$0xff]  ;;  %p640_p8 = pneg %p639_p6 }
  0x5e   : > { %p646_p3 = por %p645_p13, %p644_p10 }
  0x60   : > { %501 = vmatpush3.bf16.msra.mxu0 %v500_v10  ;;  %p647_p7 = pnand %p646_p3, %p640_p8 }
  0x61   : > { %502 = vmatprep.subr.bf16.mxu0 %v713_v0 }
  0x64   : > { %504 = vmatpush3.bf16.msra.mxu0 %v503_v13 }
  0x65   : > { %505 = vmatprep.subr.bf16.mxu0 %v713_v0 }
  0x68   : > { %507 = vmatpush3.bf16.msra.mxu0 %v506_v16 }
  0x69   : > { %508 = vmatprep.subr.bf16.mxu0 %v713_v0 }
  0x6c   : > { %510 = vmatpush3.bf16.msra.mxu0 %v509_v19 }
  0x6d   : > { %511 = vmatprep.subr.bf16.mxu0 %v713_v0 }
  0x70   : > { %513 = vmatpush3.bf16.msra.mxu0 %v512_v22 }
  0x71   : > { %514 = vmatprep.subr.bf16.mxu0 %v713_v0 }
  0x74   : > { %516 = vmatpush3.bf16.msra.mxu0 %v515_v25 }
  0x77   : > { %491 = vmatmul.mubr.f32.vlgmr.msra.gmra.mrb[0].mxu0 %v228_v26 }
 0x14a   : > { %v318_v28 = vpop.f32.mrb[0].mxu0 }
 0x14b   : > { %v319_v30 = vadd.f32 %v435_v27, %v318_v28  ;;  %v492_v31 = vpop.f32.mrb[1].mxu0 }
 0x14d   : > { %v329_v32 = vmul.f32 %v436_v29, %v319_v30 }
 0x14f   : > { %330 = vst [vmem:[%s227_s10] sm:$0xff] %v329_v32 }
 0x150   : > { %650 = shalt.err (!%p647_p7)
}
 0x151   : > { %s651_s25 = scalar_lea.hbm %s907_s5, 128  ;;  %s655_s21 = scalar_lea.hbm %s955_s4, 256 }
 0x152   : > { %p652_p9 = scmp.ne.s32.totalorder %s907_s5, %s651_s25  ;;  %p656_p0 = scmp.lt.u32.totalorder %s907_s5, %s955_s4 }
 0x153   : > { %p657_p11 = scmp.lt.u32.totalorder %s655_s21, %s651_s25  ;;  %p659_p4 = scmp.lt.u32.totalorder %s651_s25, %s907_s5 }
 0x154   : > { %p653_p2 = pnand %p652_p9, %p833_p12 }
 0x155   : > { %p658_p1 = por %p657_p11, %p656_p0 }
 0x156   : > { %p654_p5 = pneg %p653_p2 }
 0x157   : > { %p660_p6 = por %p659_p4, %p658_p1 }
 0x159   : > { %p661_p8 = pnand %p660_p6, %p654_p5 }
 0x15b   : > { %664 = shalt.err (!%p661_p8)
}
 0x15c   : > { %523 = dma.vmem_to_hbm [thread:$0]  (%p833_p12), %s909_s14, 128, %s907_s5, %s332_s7  }
 0x15d PF: > { %s357_s28 = sand.u32 1, %s695_s15   ;;  %p970_p10 = scmp.ne.s32.totalorder %s960_s22, 0 }
 0x15e   : > { %p971_p13 = scmp.ge.s32.totalorder %s707_s18, 2  ;;  %s358_s29 = scalar_lea.sflag [#allocation4], %s357_s28 }
 0x160   : > { %p534_p3 = pnand %p971_p13, %p970_p10 }
 0x162   : > { %690 = dma.done.wait (!%p534_p3), %s358_s29, 128  }
 0x163   : > { %692 = vsyncadd (!%p534_p3), %s358_s29, 4294967168  ;;  %p18_p7 = scmp.ge.s32.totalorder %s798_s27, 4   ;;  %s972_s15 = smov %s699_s16 }
 0x164   : > { %s973_s16 = smov %s703_s17  ;;  %s974_s17 = smov %s829_s24 }
 0x165   : > { %s975_s18 = smov %s798_s27  ;;  %20 = sbr.rel (!%p18_p7) target bundleno = 6 (0x6), region = 85 }
 0x16c   :  { %363 = vsyncpa [#allocation3], 1 }
 0x16d   :  { %365 = vsyncpa [#allocation3 + $0x1], 1 }
 0x16e   :  { %366 = vsyncpa [#allocation6], 1 }
 0x16f   :  { %367 = vsyncpa [#allocation4], 1 }
 0x170   :  { %369 = vsyncpa [#allocation4 + $0x1], 1 }

</bundles_post_ra>
